<compile_context>
chip_gen: v7x
topology: tpu7x:2x2x1
jax: 0.10.0
libtpu: 0.0.40
codegen_flags: <defaults>
</compile_context>

<pallas_src>
import jax
import jax.numpy as jnp
from jax.experimental import pallas as pl
from jax.experimental.pallas import tpu as pltpu


def _toeplitz_weights(w_oihw, W):
    """(Cout, Cin, 3, 3) torch-layout conv weight -> (3, W*Cin, W*Cout).

    T[kh, wp*Cin + ci, w*Cout + co] == w[co, ci, kh, (wp - w) + 1] when
    |wp - w| <= 1, else 0 — i.e. the kw taps and the width-direction zero
    padding are folded into a banded matrix so the conv over W is one matmul.
    """
    Cout, Cin = int(w_oihw.shape[0]), int(w_oihw.shape[1])
    k = jnp.transpose(w_oihw, (2, 3, 1, 0)).astype(jnp.float32)   # (kh, kw, Cin, Cout)
    diff = jnp.arange(W)[:, None] - jnp.arange(W)[None, :]        # wp - w
    valid = jnp.abs(diff) <= 1
    sel = jnp.where(valid, diff + 1, 0)                           # kw index (dummy 0 if invalid)
    blocks = k[:, sel, :, :] * valid[None, :, :, None, None].astype(jnp.float32)
    # (3, W_in, W_out, Cin, Cout) -> (3, W_in, Cin, W_out, Cout) -> (3, W*Cin, W*Cout)
    return blocks.transpose(0, 1, 3, 2, 4).reshape(3, W * Cin, W * Cout)


def _channel_pool(W, C):
    """(W*C, W*C) 0/1 matrix; row-vector @ M sums lanes sharing a channel and
    broadcasts each per-channel total back to every packed lane position."""
    idx = jnp.arange(W * C)
    return (idx[:, None] % C == idx[None, :] % C).astype(jnp.float32)


def _make_kernel(N, H, W, Cin, Cout, eps=1e-5):
    L1, L2 = W * Cin, W * Cout
    inv_n = 1.0 / float(N * H * W)      # BN reduction count per channel

    def conv3(pad_ref, t_ref, L):
        """3x3 conv: three sublane-shifted matmuls against banded weights."""
        def tap(kh):
            lhs = pad_ref[:, kh:kh + H, :].reshape(N * H, L)
            return jnp.dot(lhs, t_ref[kh], preferred_element_type=jnp.float32)
        return tap(0) + tap(1) + tap(2)

    def bn_relu(y, m, g_p, b_p):
        """Training-mode BatchNorm2d (affine) + ReLU on packed (N*H, W*Cout) y."""
        s = jnp.sum(y, axis=0, keepdims=True)            # (1, L2)
        s2 = jnp.sum(y * y, axis=0, keepdims=True)       # (1, L2)  one-pass stats
        mean = jnp.dot(s, m, preferred_element_type=jnp.float32) * inv_n   # per-channel, packed
        ex2 = jnp.dot(s2, m, preferred_element_type=jnp.float32) * inv_n
        var = ex2 - mean * mean                          # biased variance
        scale = g_p * jax.lax.rsqrt(var + eps)
        shift = b_p - mean * scale
        return jnp.maximum(y * scale + shift, 0.0)

    def kernel(xpad_ref, t1_ref, t2_ref, m_ref,
               g1_ref, be1_ref, g2_ref, be2_ref,
               o_ref, pad2):
        m = m_ref[...]

        # ---- conv1 (3x3, stride 1, pad 1) + BN + ReLU ----
        y1 = bn_relu(conv3(xpad_ref, t1_ref, L1), m, g1_ref[...], be1_ref[...])

        # Stage-1 result goes straight into conv2's H-padded scratch; only the
        # 1-row halo is zeroed (no full-buffer fill, no separate y1 staging).
        pad2[:, 0:1, :] = jnp.zeros((N, 1, L2), jnp.float32)
        pad2[:, H + 1:H + 2, :] = jnp.zeros((N, 1, L2), jnp.float32)
        pad2[:, 1:H + 1, :] = y1.reshape(N, H, L2)

        # ---- conv2 (3x3, stride 1, pad 1) + BN + ReLU ----
        y2 = bn_relu(conv3(pad2, t2_ref, L2), m, g2_ref[...], be2_ref[...])

        o_ref[...] = y2.astype(o_ref.dtype)   # (N*H, W*Cout): lane-dense store

    return kernel


def conv_block_forward(x_nchw, params):
    """x_nchw: (N, Cin, H, W) float32. Returns (N, Cout, H, W) float32."""
    w1, b1, g1, be1, w2, b2, g2, be2 = params
    del b1, b2  # conv biases are exactly cancelled by training-mode BN mean subtraction
    N, Cin, H, W = x_nchw.shape
    Cout = int(w1.shape[0])

    # Pack (W, C) onto lanes; pad H with a 1-row zero halo (wrapper-side plumbing).
    x_rows = jnp.transpose(x_nchw, (0, 2, 3, 1)).astype(jnp.float32).reshape(N, H, W * Cin)
    x_pad = jnp.pad(x_rows, ((0, 0), (1, 1), (0, 0)))                    # (N, H+2, W*Cin)

    t1 = _toeplitz_weights(w1, W)                                        # (3, W*Cin,  W*Cout)
    t2 = _toeplitz_weights(w2, W)                                        # (3, W*Cout, W*Cout)
    m = _channel_pool(W, Cout)                                           # (W*Cout, W*Cout)
    pack = lambda v: jnp.tile(v.reshape(1, Cout).astype(jnp.float32), (1, W))  # (1, W*Cout)

    vm = pl.BlockSpec(memory_space=pltpu.MemorySpace.VMEM)
    out2d = pl.pallas_call(
        _make_kernel(N, H, W, Cin, Cout),
        out_shape=jax.ShapeDtypeStruct((N * H, W * Cout), jnp.float32),
        in_specs=[vm] * 8,
        out_specs=vm,
        scratch_shapes=[pltpu.VMEM((N, H + 2, W * Cout), jnp.float32)],  # conv2's H-padded input
    )(x_pad, t1, t2, m, pack(g1), pack(be1), pack(g2), pack(be2))

    return jnp.transpose(out2d.reshape(N, H, W, Cout), (0, 3, 1, 2))     # back to NCHW


def _reference_forward(x, params, eps=1e-5):
    """Plain-JAX reference matching the PyTorch module (training-mode BN)."""
    w1, b1, g1, be1, w2, b2, g2, be2 = params

    def conv_bn_relu(x, w, b, g, be):
        y = jax.lax.conv_general_dilated(
            x, w, window_strides=(1, 1), padding=((1, 1), (1, 1)),
            dimension_numbers=("NCHW", "OIHW", "NCHW"))
        y = y + b.reshape(1, -1, 1, 1)
        mean = jnp.mean(y, axis=(0, 2, 3), keepdims=True)
        var = jnp.mean((y - mean) ** 2, axis=(0, 2, 3), keepdims=True)
        y = (y - mean) * jax.lax.rsqrt(var + eps)
        y = y * g.reshape(1, -1, 1, 1) + be.reshape(1, -1, 1, 1)
        return jnp.maximum(y, 0.0)

    return conv_bn_relu(conv_bn_relu(x, w1, b1, g1, be1), w2, b2, g2, be2)


if __name__ == "__main__":
    key = jax.random.PRNGKey(0)
    kx, kw1, kb1, kw2, kb2 = jax.random.split(key, 5)

    # Small shapes consistent with the module: batch=2, Cin=4, Cout=8, 16x16.
    N, Cin, Cout, H, W = 2, 4, 8, 16, 16

    x = jax.random.normal(kx, (N, Cin, H, W), jnp.float32)

    # Deterministic conv parameter init (uniform, fan-in scaled like PyTorch).
    fan1 = float(Cin * 3 * 3)
    w1 = jax.random.uniform(kw1, (Cout, Cin, 3, 3), jnp.float32, -1.0, 1.0) / jnp.sqrt(fan1)
    b1 = jax.random.uniform(kb1, (Cout,), jnp.float32, -1.0, 1.0) / jnp.sqrt(fan1)
    fan2 = float(Cout * 3 * 3)
    w2 = jax.random.uniform(kw2, (Cout, Cout, 3, 3), jnp.float32, -1.0, 1.0) / jnp.sqrt(fan2)
    b2 = jax.random.uniform(kb2, (Cout,), jnp.float32, -1.0, 1.0) / jnp.sqrt(fan2)

    # BatchNorm2d affine params: PyTorch default init (weight=1, bias=0).
    g1 = jnp.ones((Cout,), jnp.float32)
    be1 = jnp.zeros((Cout,), jnp.float32)
    g2 = jnp.ones((Cout,), jnp.float32)
    be2 = jnp.zeros((Cout,), jnp.float32)

    params = (w1, b1, g1, be1, w2, b2, g2, be2)

    out = conv_block_forward(x, params)
    jax.block_until_ready(out)
    assert out.shape == (N, Cout, H, W), out.shape
    assert bool(jnp.all(out >= 0.0))  # final ReLU

    ref = _reference_forward(x, params)
    max_err = float(jnp.max(jnp.abs(out - ref)))
    assert max_err < 2e-3, f"max abs err vs reference: {max_err}"

    print("KERNEL_OK")
</pallas_src>

<mosaic_0001>
module attributes {stable_mosaic.version = 11 : i64} {
  func.func @kernel(%arg0: memref<2x18x64xf32, #tpu.memory_space<vmem>>, %arg1: memref<3x64x128xf32, #tpu.memory_space<vmem>>, %arg2: memref<3x128x128xf32, #tpu.memory_space<vmem>>, %arg3: memref<128x128xf32, #tpu.memory_space<vmem>>, %arg4: memref<1x128xf32, #tpu.memory_space<vmem>>, %arg5: memref<1x128xf32, #tpu.memory_space<vmem>>, %arg6: memref<1x128xf32, #tpu.memory_space<vmem>>, %arg7: memref<1x128xf32, #tpu.memory_space<vmem>>, %arg8: memref<32x128xf32, #tpu.memory_space<vmem>>, %arg9: memref<2x18x128xf32, #tpu.memory_space<vmem>>) attributes {dimension_semantics = [], scalar_prefetch = 0 : i64, scratch_operands = 1 : i64, tpu.core_type = #tpu.core_type<tc>} {
    %c0 = arith.constant 0 : index
    %c0_0 = arith.constant 0 : index
    %0 = vector.load %arg3[%c0, %c0_0] : memref<128x128xf32, #tpu.memory_space<vmem>>, vector<128x128xf32>
    %c0_1 = arith.constant 0 : index
    %c0_2 = arith.constant 0 : index
    %c0_3 = arith.constant 0 : index
    %1 = vector.load %arg0[%c0_1, %c0_2, %c0_3] : memref<2x18x64xf32, #tpu.memory_space<vmem>>, vector<2x16x64xf32>
    %2 = vector.shape_cast %1 : vector<2x16x64xf32> to vector<32x64xf32>
    %c0_4 = arith.constant 0 : index
    %c0_5 = arith.constant 0 : index
    %c0_6 = arith.constant 0 : index
    %3 = vector.load %arg1[%c0_4, %c0_5, %c0_6] : memref<3x64x128xf32, #tpu.memory_space<vmem>>, vector<1x64x128xf32>
    %4 = vector.shape_cast %3 : vector<1x64x128xf32> to vector<64x128xf32>
    %cst = arith.constant dense<0.000000e+00> : vector<32x128xf32>
    %5 = tpu.matmul %2, %4, %cst {dimension_numbers = #tpu.dot_dimension_numbers<[1], [0], [0], [1], [0, 0, 1, 1], [], []>} : vector<32x64xf32>, vector<64x128xf32>, vector<32x128xf32> -> vector<32x128xf32>
    %c0_7 = arith.constant 0 : index
    %c1 = arith.constant 1 : index
    %c0_8 = arith.constant 0 : index
    %6 = vector.load %arg0[%c0_7, %c1, %c0_8] : memref<2x18x64xf32, #tpu.memory_space<vmem>>, vector<2x16x64xf32>
    %7 = vector.shape_cast %6 : vector<2x16x64xf32> to vector<32x64xf32>
    %c1_9 = arith.constant 1 : index
    %c0_10 = arith.constant 0 : index
    %c0_11 = arith.constant 0 : index
    %8 = vector.load %arg1[%c1_9, %c0_10, %c0_11] : memref<3x64x128xf32, #tpu.memory_space<vmem>>, vector<1x64x128xf32>
    %9 = vector.shape_cast %8 : vector<1x64x128xf32> to vector<64x128xf32>
    %cst_12 = arith.constant dense<0.000000e+00> : vector<32x128xf32>
    %10 = tpu.matmul %7, %9, %cst_12 {dimension_numbers = #tpu.dot_dimension_numbers<[1], [0], [0], [1], [0, 0, 1, 1], [], []>} : vector<32x64xf32>, vector<64x128xf32>, vector<32x128xf32> -> vector<32x128xf32>
    %11 = arith.addf %5, %10 : vector<32x128xf32>
    %c0_13 = arith.constant 0 : index
    %c2 = arith.constant 2 : index
    %c0_14 = arith.constant 0 : index
    %12 = vector.load %arg0[%c0_13, %c2, %c0_14] : memref<2x18x64xf32, #tpu.memory_space<vmem>>, vector<2x16x64xf32>
    %13 = vector.shape_cast %12 : vector<2x16x64xf32> to vector<32x64xf32>
    %c2_15 = arith.constant 2 : index
    %c0_16 = arith.constant 0 : index
    %c0_17 = arith.constant 0 : index
    %14 = vector.load %arg1[%c2_15, %c0_16, %c0_17] : memref<3x64x128xf32, #tpu.memory_space<vmem>>, vector<1x64x128xf32>
    %15 = vector.shape_cast %14 : vector<1x64x128xf32> to vector<64x128xf32>
    %cst_18 = arith.constant dense<0.000000e+00> : vector<32x128xf32>
    %16 = tpu.matmul %13, %15, %cst_18 {dimension_numbers = #tpu.dot_dimension_numbers<[1], [0], [0], [1], [0, 0, 1, 1], [], []>} : vector<32x64xf32>, vector<64x128xf32>, vector<32x128xf32> -> vector<32x128xf32>
    %17 = arith.addf %11, %16 : vector<32x128xf32>
    %c0_19 = arith.constant 0 : index
    %c0_20 = arith.constant 0 : index
    %18 = vector.load %arg4[%c0_19, %c0_20] : memref<1x128xf32, #tpu.memory_space<vmem>>, vector<1x128xf32>
    %c0_21 = arith.constant 0 : index
    %c0_22 = arith.constant 0 : index
    %19 = vector.load %arg5[%c0_21, %c0_22] : memref<1x128xf32, #tpu.memory_space<vmem>>, vector<1x128xf32>
    %cst_23 = arith.constant dense<0.000000e+00> : vector<128xf32>
    %20 = vector.multi_reduction <add>, %17, %cst_23 [0] : vector<32x128xf32> to vector<128xf32>
    %21 = vector.shape_cast %20 : vector<128xf32> to vector<1x128xf32>
    %22 = arith.mulf %17, %17 : vector<32x128xf32>
    %cst_24 = arith.constant dense<0.000000e+00> : vector<128xf32>
    %23 = vector.multi_reduction <add>, %22, %cst_24 [0] : vector<32x128xf32> to vector<128xf32>
    %24 = vector.shape_cast %23 : vector<128xf32> to vector<1x128xf32>
    %cst_25 = arith.constant dense<0.000000e+00> : vector<1x128xf32>
    %25 = tpu.matmul %21, %0, %cst_25 {dimension_numbers = #tpu.dot_dimension_numbers<[1], [0], [0], [1], [0, 0, 1, 1], [], []>} : vector<1x128xf32>, vector<128x128xf32>, vector<1x128xf32> -> vector<1x128xf32>
    %cst_26 = arith.constant 0.001953125 : f32
    %26 = vector.broadcast %cst_26 : f32 to vector<1x128xf32>
    %27 = arith.mulf %25, %26 : vector<1x128xf32>
    %cst_27 = arith.constant dense<0.000000e+00> : vector<1x128xf32>
    %28 = tpu.matmul %24, %0, %cst_27 {dimension_numbers = #tpu.dot_dimension_numbers<[1], [0], [0], [1], [0, 0, 1, 1], [], []>} : vector<1x128xf32>, vector<128x128xf32>, vector<1x128xf32> -> vector<1x128xf32>
    %cst_28 = arith.constant 0.001953125 : f32
    %29 = vector.broadcast %cst_28 : f32 to vector<1x128xf32>
    %30 = arith.mulf %28, %29 : vector<1x128xf32>
    %31 = arith.mulf %27, %27 : vector<1x128xf32>
    %32 = arith.subf %30, %31 : vector<1x128xf32>
    %cst_29 = arith.constant 9.99999974E-6 : f32
    %33 = vector.broadcast %cst_29 : f32 to vector<1x128xf32>
    %34 = arith.addf %32, %33 : vector<1x128xf32>
    %35 = math.rsqrt %34 : vector<1x128xf32>
    %36 = arith.mulf %18, %35 : vector<1x128xf32>
    %37 = arith.mulf %27, %36 : vector<1x128xf32>
    %38 = arith.subf %19, %37 : vector<1x128xf32>
    %39 = vector.broadcast %36 : vector<1x128xf32> to vector<32x128xf32>
    %40 = arith.mulf %17, %39 : vector<32x128xf32>
    %41 = vector.broadcast %38 : vector<1x128xf32> to vector<32x128xf32>
    %42 = arith.addf %40, %41 : vector<32x128xf32>
    %cst_30 = arith.constant 0.000000e+00 : f32
    %43 = vector.broadcast %cst_30 : f32 to vector<32x128xf32>
    %44 = arith.maximumf %42, %43 : vector<32x128xf32>
    %cst_31 = arith.constant 0.000000e+00 : f32
    %45 = vector.broadcast %cst_31 : f32 to vector<2x1x128xf32>
    %c0_32 = arith.constant 0 : index
    %c0_33 = arith.constant 0 : index
    %c0_34 = arith.constant 0 : index
    %46 = vector.load %arg9[%c0_32, %c0_33, %c0_34] : memref<2x18x128xf32, #tpu.memory_space<vmem>>, vector<2x1x128xf32>
    tpu.vector_store %arg9[%c0_32, %c0_33, %c0_34], %45 {strides = array<i32>} : memref<2x18x128xf32, #tpu.memory_space<vmem>>, vector<2x1x128xf32>,
    %cst_35 = arith.constant 0.000000e+00 : f32
    %47 = vector.broadcast %cst_35 : f32 to vector<2x1x128xf32>
    %c0_36 = arith.constant 0 : index
    %c17 = arith.constant 17 : index
    %c0_37 = arith.constant 0 : index
    %48 = vector.load %arg9[%c0_36, %c17, %c0_37] : memref<2x18x128xf32, #tpu.memory_space<vmem>>, vector<2x1x128xf32>
    tpu.vector_store %arg9[%c0_36, %c17, %c0_37], %47 {strides = array<i32>} : memref<2x18x128xf32, #tpu.memory_space<vmem>>, vector<2x1x128xf32>,
    %49 = vector.shape_cast %44 : vector<32x128xf32> to vector<2x16x128xf32>
    %c0_38 = arith.constant 0 : index
    %c1_39 = arith.constant 1 : index
    %c0_40 = arith.constant 0 : index
    %50 = vector.load %arg9[%c0_38, %c1_39, %c0_40] : memref<2x18x128xf32, #tpu.memory_space<vmem>>, vector<2x16x128xf32>
    tpu.vector_store %arg9[%c0_38, %c1_39, %c0_40], %49 {strides = array<i32>} : memref<2x18x128xf32, #tpu.memory_space<vmem>>, vector<2x16x128xf32>,
    %c0_41 = arith.constant 0 : index
    %c0_42 = arith.constant 0 : index
    %c0_43 = arith.constant 0 : index
    %51 = vector.load %arg9[%c0_41, %c0_42, %c0_43] : memref<2x18x128xf32, #tpu.memory_space<vmem>>, vector<2x16x128xf32>
    %52 = vector.shape_cast %51 : vector<2x16x128xf32> to vector<32x128xf32>
    %c0_44 = arith.constant 0 : index
    %c0_45 = arith.constant 0 : index
    %c0_46 = arith.constant 0 : index
    %53 = vector.load %arg2[%c0_44, %c0_45, %c0_46] : memref<3x128x128xf32, #tpu.memory_space<vmem>>, vector<1x128x128xf32>
    %54 = vector.shape_cast %53 : vector<1x128x128xf32> to vector<128x128xf32>
    %cst_47 = arith.constant dense<0.000000e+00> : vector<32x128xf32>
    %55 = tpu.matmul %52, %54, %cst_47 {dimension_numbers = #tpu.dot_dimension_numbers<[1], [0], [0], [1], [0, 0, 1, 1], [], []>} : vector<32x128xf32>, vector<128x128xf32>, vector<32x128xf32> -> vector<32x128xf32>
    %c0_48 = arith.constant 0 : index
    %c1_49 = arith.constant 1 : index
    %c0_50 = arith.constant 0 : index
    %56 = vector.load %arg9[%c0_48, %c1_49, %c0_50] : memref<2x18x128xf32, #tpu.memory_space<vmem>>, vector<2x16x128xf32>
    %57 = vector.shape_cast %56 : vector<2x16x128xf32> to vector<32x128xf32>
    %c1_51 = arith.constant 1 : index
    %c0_52 = arith.constant 0 : index
    %c0_53 = arith.constant 0 : index
    %58 = vector.load %arg2[%c1_51, %c0_52, %c0_53] : memref<3x128x128xf32, #tpu.memory_space<vmem>>, vector<1x128x128xf32>
    %59 = vector.shape_cast %58 : vector<1x128x128xf32> to vector<128x128xf32>
    %cst_54 = arith.constant dense<0.000000e+00> : vector<32x128xf32>
    %60 = tpu.matmul %57, %59, %cst_54 {dimension_numbers = #tpu.dot_dimension_numbers<[1], [0], [0], [1], [0, 0, 1, 1], [], []>} : vector<32x128xf32>, vector<128x128xf32>, vector<32x128xf32> -> vector<32x128xf32>
    %61 = arith.addf %55, %60 : vector<32x128xf32>
    %c0_55 = arith.constant 0 : index
    %c2_56 = arith.constant 2 : index
    %c0_57 = arith.constant 0 : index
    %62 = vector.load %arg9[%c0_55, %c2_56, %c0_57] : memref<2x18x128xf32, #tpu.memory_space<vmem>>, vector<2x16x128xf32>
    %63 = vector.shape_cast %62 : vector<2x16x128xf32> to vector<32x128xf32>
    %c2_58 = arith.constant 2 : index
    %c0_59 = arith.constant 0 : index
    %c0_60 = arith.constant 0 : index
    %64 = vector.load %arg2[%c2_58, %c0_59, %c0_60] : memref<3x128x128xf32, #tpu.memory_space<vmem>>, vector<1x128x128xf32>
    %65 = vector.shape_cast %64 : vector<1x128x128xf32> to vector<128x128xf32>
    %cst_61 = arith.constant dense<0.000000e+00> : vector<32x128xf32>
    %66 = tpu.matmul %63, %65, %cst_61 {dimension_numbers = #tpu.dot_dimension_numbers<[1], [0], [0], [1], [0, 0, 1, 1], [], []>} : vector<32x128xf32>, vector<128x128xf32>, vector<32x128xf32> -> vector<32x128xf32>
    %67 = arith.addf %61, %66 : vector<32x128xf32>
    %c0_62 = arith.constant 0 : index
    %c0_63 = arith.constant 0 : index
    %68 = vector.load %arg6[%c0_62, %c0_63] : memref<1x128xf32, #tpu.memory_space<vmem>>, vector<1x128xf32>
    %c0_64 = arith.constant 0 : index
    %c0_65 = arith.constant 0 : index
    %69 = vector.load %arg7[%c0_64, %c0_65] : memref<1x128xf32, #tpu.memory_space<vmem>>, vector<1x128xf32>
    %cst_66 = arith.constant dense<0.000000e+00> : vector<128xf32>
    %70 = vector.multi_reduction <add>, %67, %cst_66 [0] : vector<32x128xf32> to vector<128xf32>
    %71 = vector.shape_cast %70 : vector<128xf32> to vector<1x128xf32>
    %72 = arith.mulf %67, %67 : vector<32x128xf32>
    %cst_67 = arith.constant dense<0.000000e+00> : vector<128xf32>
    %73 = vector.multi_reduction <add>, %72, %cst_67 [0] : vector<32x128xf32> to vector<128xf32>
    %74 = vector.shape_cast %73 : vector<128xf32> to vector<1x128xf32>
    %cst_68 = arith.constant dense<0.000000e+00> : vector<1x128xf32>
    %75 = tpu.matmul %71, %0, %cst_68 {dimension_numbers = #tpu.dot_dimension_numbers<[1], [0], [0], [1], [0, 0, 1, 1], [], []>} : vector<1x128xf32>, vector<128x128xf32>, vector<1x128xf32> -> vector<1x128xf32>
    %cst_69 = arith.constant 0.001953125 : f32
    %76 = vector.broadcast %cst_69 : f32 to vector<1x128xf32>
    %77 = arith.mulf %75, %76 : vector<1x128xf32>
    %cst_70 = arith.constant dense<0.000000e+00> : vector<1x128xf32>
    %78 = tpu.matmul %74, %0, %cst_70 {dimension_numbers = #tpu.dot_dimension_numbers<[1], [0], [0], [1], [0, 0, 1, 1], [], []>} : vector<1x128xf32>, vector<128x128xf32>, vector<1x128xf32> -> vector<1x128xf32>
    %cst_71 = arith.constant 0.001953125 : f32
    %79 = vector.broadcast %cst_71 : f32 to vector<1x128xf32>
    %80 = arith.mulf %78, %79 : vector<1x128xf32>
    %81 = arith.mulf %77, %77 : vector<1x128xf32>
    %82 = arith.subf %80, %81 : vector<1x128xf32>
    %cst_72 = arith.constant 9.99999974E-6 : f32
    %83 = vector.broadcast %cst_72 : f32 to vector<1x128xf32>
    %84 = arith.addf %82, %83 : vector<1x128xf32>
    %85 = math.rsqrt %84 : vector<1x128xf32>
    %86 = arith.mulf %68, %85 : vector<1x128xf32>
    %87 = arith.mulf %77, %86 : vector<1x128xf32>
    %88 = arith.subf %69, %87 : vector<1x128xf32>
    %89 = vector.broadcast %86 : vector<1x128xf32> to vector<32x128xf32>
    %90 = arith.mulf %67, %89 : vector<32x128xf32>
    %91 = vector.broadcast %88 : vector<1x128xf32> to vector<32x128xf32>
    %92 = arith.addf %90, %91 : vector<32x128xf32>
    %cst_73 = arith.constant 0.000000e+00 : f32
    %93 = vector.broadcast %cst_73 : f32 to vector<32x128xf32>
    %94 = arith.maximumf %92, %93 : vector<32x128xf32>
    %c0_74 = arith.constant 0 : index
    %c0_75 = arith.constant 0 : index
    %95 = vector.load %arg8[%c0_74, %c0_75] : memref<32x128xf32, #tpu.memory_space<vmem>>, vector<32x128xf32>
    tpu.vector_store %arg8[%c0_74, %c0_75], %94 {strides = array<i32>} : memref<32x128xf32, #tpu.memory_space<vmem>>, vector<32x128xf32>,
    return
  }
}

</mosaic_0001>

<bundles_post_ra>
// kernel: tpu_custom_call.1
= control target key start
LH: loop header
LB: loop body
LE: loop exit
PB: predicated region body
PF: predicated region fallthrough
CT: control target
= control target key end

     0   :  { %13 = vsyncpa [#allocation4], 0  ;;  %s2328_s0 = inlined_call_operand.vmem [shape: f32[2,18,64], index: 0, kind: input, shape index: {}]   ;;  %s2329_s1 = inlined_call_operand.hbm [shape: f32[3,64,128], index: 1, kind: input, shape index: {}]   ;;  %s2330_s2 = inlined_call_operand.hbm [shape: f32[3,128,128], index: 2, kind: input, shape index: {}]   ;;  %s2331_s3 = inlined_call_operand.hbm [shape: f32[128,128], index: 3, kind: input, shape index: {}]   ;;  %s2332_s4 = inlined_call_operand.vmem [shape: f32[1,128], index: 4, kind: input, shape index: {}]   ;;  %s2333_s5 = inlined_call_operand.vmem [shape: f32[1,128], index: 5, kind: input, shape index: {}]   ;;  %s2334_s6 = inlined_call_operand.vmem [shape: f32[1,128], index: 6, kind: input, shape index: {}]   ;;  %s2335_s7 = inlined_call_operand.vmem [shape: f32[1,128], index: 7, kind: input, shape index: {}]   ;;  %s2336_s8 = inlined_call_operand.hbm [shape: f32[32,128], index: 8, kind: output, shape index: {}]  }
   0x1   :  { %14 = vsyncpa [#allocation7], 0 }
   0x2   :  { %15 = vsyncpa [#allocation5], 0  ;;  %s2025_s27 = smov [#allocation6]   ;;  %s2026_s29 = smov [#allocation3]  }
   0x3   :  { %s35_s28 = sshll.u32 %s2025_s27, 4  ;;  %s23_s30 = sshll.u32 %s2026_s29, 4  ;;  %s36_s28 = int_to_ptr.vmem [resolvable:$true] %s35_s28  ;;  %s2079_s30 = int_to_ptr.vmem [resolvable:$true] %s23_s30 }
   0x4   :  { %s1931_s11 = scalar_lea.hbm %s2330_s2, 6144 }
   0x5   :  { %p1932_p0 = scmp.ne.s32.totalorder %s2330_s2, %s1931_s11  ;;  %p1935_p1 = scmp.lt.u32.totalorder %s1931_s11, %s2330_s2 }
   0x7   :  { %p1937_p2 = pnand %p1935_p1, %p1932_p0 }
   0x9   :  { %1940 = shalt.err (!%p1937_p2)
}
   0xa   :  { %s1941_s16 = scalar_lea.vmem %s36_s28, 6144  ;;  %p1946_p4 = scmp.lt.s32.totalorder %s36_s28, %s36_s28 }
   0xb   :  { %p1942_p3 = scmp.ne.s32.totalorder %s36_s28, %s1941_s16  ;;  %p1947_p5 = scmp.lt.s32.totalorder %s1941_s16, %s1941_s16 }
   0xd   :  { %p1948_p6 = por %p1947_p5, %p1946_p4 }
   0xf   :  { %p1949_p7 = pnand %p1948_p6, %p1942_p3 }
  0x11   :  { %1952 = shalt.err (!%p1949_p7)
}
  0x12   :  { %s2027_s17 = smov 128   ;;  %s2028_s18 = smov 8  }
  0x13   :  { %41 = dma.hbm_to_vmem [thread:$0]  %s2330_s2, 6144, %s36_s28, [#allocation7], %s2027_s17, %s2027_s17, %s2028_s18  }
  0x14   :  { %s1953_s23 = scalar_lea.hbm %s2329_s1, 3072 }
  0x15   :  { %p1954_p8 = scmp.ne.s32.totalorder %s2329_s1, %s1953_s23  ;;  %p1957_p9 = scmp.lt.u32.totalorder %s1953_s23, %s2329_s1 }
  0x17   :  { %p1959_p10 = pnand %p1957_p9, %p1954_p8 }
  0x19   :  { %1962 = shalt.err (!%p1959_p10)
}
  0x1a   :  { %s1963_s29 = scalar_lea.vmem %s2079_s30, 3072  ;;  %p1968_p12 = scmp.lt.s32.totalorder %s2079_s30, %s2079_s30 }
  0x1b   :  { %p1964_p11 = scmp.ne.s32.totalorder %s2079_s30, %s1963_s29  ;;  %p1969_p13 = scmp.lt.s32.totalorder %s1963_s29, %s1963_s29 }
  0x1d   :  { %p1970_p0 = por %p1969_p13, %p1968_p12 }
  0x1f   :  { %p1971_p1 = pnand %p1970_p0, %p1964_p11 }
  0x21   :  { %1974 = shalt.err (!%p1971_p1)
}
  0x22   :  { %29 = dma.hbm_to_vmem [thread:$0]  %s2329_s1, 3072, %s2079_s30, [#allocation4], %s2027_s17, %s2027_s17, %s2028_s18  }
  0x23   :  { %s2029_s9 = smov [#allocation8]   ;;  %s1975_s13 = scalar_lea.hbm %s2331_s3, 2048 }
  0x24   :  { %s47_s10 = sshll.u32 %s2029_s9, 4  ;;  %p1976_p2 = scmp.ne.s32.totalorder %s2331_s3, %s1975_s13  ;;  %s48_s10 = int_to_ptr.vmem [resolvable:$true] %s47_s10 }
  0x25   :  { %p1979_p3 = scmp.lt.u32.totalorder %s1975_s13, %s2331_s3 }
  0x27   :  { %p1981_p4 = pnand %p1979_p3, %p1976_p2 }
  0x29   :  { %1984 = shalt.err (!%p1981_p4)
}
  0x2a   :  { %s1985_s20 = scalar_lea.vmem %s48_s10, 2048  ;;  %p1990_p6 = scmp.lt.s32.totalorder %s48_s10, %s48_s10 }
  0x2b   :  { %p1986_p5 = scmp.ne.s32.totalorder %s48_s10, %s1985_s20  ;;  %p1991_p7 = scmp.lt.s32.totalorder %s1985_s20, %s1985_s20 }
  0x2d   :  { %p1992_p8 = por %p1991_p7, %p1990_p6 }
  0x2f   :  { %p1993_p9 = pnand %p1992_p8, %p1986_p5 }
  0x31   :  { %1996 = shalt.err (!%p1993_p9)
}
  0x32   :  { %53 = dma.hbm_to_vmem [thread:$0]  %s2331_s3, 2048, %s48_s10, [#allocation7], %s2027_s17, %s2027_s17, %s2028_s18  }
  0x33   :  { %2019 = dma.done.wait [#allocation4], 3072  }
  0x34   :  { %2020 = vsyncadd [#allocation4], 4294964224 }
  0x35   :  { %2021 = dma.done.wait [#allocation7], 8192  }
  0x36   :  { %2022 = vsyncadd [#allocation7], 4294959104  ;;  %v91_v0 = vld [vmem:[#allocation3] sm:$0xff]  ;;  %v92_v1 = vld [vmem:[#allocation3 + $0x8] sm:$0xff]  ;;  %vm112_vm0 = vcmask 523264   ;;  %v2030_v44 = vmov 0.0|0.0  }
  0x37   :  { %v93_v2 = vld [vmem:[#allocation3 + $0x10] sm:$0xff]  ;;  %v1678_v3 = vpack.c.bf16 %v92_v1, %v91_v0  ;;  %v94_v4 = vld [vmem:[#allocation3 + $0x18] sm:$0xff]  ;;  %v95_v6 = vld [vmem:[#allocation3 + $0x20] sm:$0xff]  ;;  %vm2031_vm1 = vmmov 0   ;;  %s2033_s26 = smov [#allocation9]  }
  0x38   :  { %v1682_v5 = vpack.c.bf16 %v94_v4, %v93_v2  ;;  %v96_v7 = vld [vmem:[#allocation3 + $0x28] sm:$0xff]  ;;  %v104_v8 = vld [vmem:[#allocation3 + $0x40] sm:$0xff]  ;;  %v87_v10 = vld [vmem:[%s2328_s0] sm:$0xff]  ;;  %s1153_s27 = sshll.u32 %s2033_s26, 4  ;;  %s1154_s27 = int_to_ptr.vmem [resolvable:$true] %s1153_s27 }
  0x39   :  { %1679 = vmatprep.subr.bf16.mxu0 %v1678_v3  ;;  %v105_v9 = vld [vmem:[#allocation3 + $0x48] sm:$0xff]  ;;  %1380 = vmatprep.mubr.msk.f32.mxu0 %vm112_vm0, %v87_v10  ;;  %v106_v12 = vld [vmem:[#allocation3 + $0x50] sm:$0xff]  ;;  %v1686_v13 = vpack.c.bf16 %v96_v7, %v95_v6  ;;  %v107_v15 = vld [vmem:[#allocation3 + $0x58] sm:$0xff]  ;;  %p2002_p11 = scmp.lt.s32.totalorder %s1154_s27, %s1154_s27 }
  0x3a   :  { %1681 = vmatpush3.bf16.msra.mxu0 %v1678_v3  ;;  %v1662_v11 = vpack.c.bf16 %v105_v9, %v104_v8  ;;  %v97_v14 = vld [vmem:[#allocation3 + $0x30] sm:$0xff]  ;;  %v98_v16 = vld [vmem:[#allocation3 + $0x38] sm:$0xff]  ;;  %v1666_v17 = vpack.c.bf16 %v107_v15, %v106_v12  ;;  %v108_v18 = vld [vmem:[#allocation3 + $0x60] sm:$0xff]  ;;  %v2032_v9 = vmov 0.0  }
  0x3b   :  { %1683 = vmatprep.subr.bf16.mxu0 %v1682_v5  ;;  %v109_v19 = vld [vmem:[#allocation3 + $0x68] sm:$0xff]  ;;  %v1690_v21 = vpack.c.bf16 %v98_v16, %v97_v14  ;;  %v110_v22 = vld [vmem:[#allocation3 + $0x70] sm:$0xff]  ;;  %v111_v23 = vld [vmem:[#allocation3 + $0x78] sm:$0xff]  ;;  %618 = vst [vmem:[#allocation2] sm:$0x1] %v2032_v9 }
  0x3c   :  { %1663 = vmatprep.subr.bf16.mxu1 %v1662_v11  ;;  %v1670_v20 = vpack.c.bf16 %v109_v19, %v108_v18  ;;  %v99_v24 = vld [vmem:[%s2328_s0 + $0x1] sm:$0xff]  ;;  %v312_v25 = vld [vmem:[#allocation3 + $0x80] sm:$0xff]  ;;  %v313_v26 = vld [vmem:[#allocation3 + $0x88] sm:$0xff]  ;;  %v1674_v27 = vpack.c.bf16 %v111_v23, %v110_v22  ;;  %619 = vst [vmem:[#allocation2 + $0x18] sm:$0x1] %v2032_v9 }
  0x3d   :  { %1665 = vmatpush3.bf16.msra.mxu1 %v1662_v11  ;;  %1358 = vmatprep.mubr.msk.f32.mxu1 %vm112_vm0, %v99_v24  ;;  %v1694_v28 = vpack.c.bf16 %v313_v26, %v312_v25  ;;  %v314_v29 = vld [vmem:[#allocation3 + $0x90] sm:$0xff]  ;;  %v315_v30 = vld [vmem:[#allocation3 + $0x98] sm:$0xff]  ;;  %v316_v33 = vld [vmem:[#allocation3 + $0xa0] sm:$0xff]  ;;  %620 = vst [vmem:[#allocation2 + $0x11] sm:$0x1] %v2032_v9 }
  0x3e   :  { %1685 = vmatpush3.bf16.msra.mxu0 %v1682_v5  ;;  %1667 = vmatprep.subr.bf16.mxu1 %v1666_v17  ;;  %v88_v31 = vld [vmem:[%s2328_s0 + $0x8] sm:$0xff]  ;;  %v1698_v32 = vpack.c.bf16 %v315_v30, %v314_v29  ;;  %v89_v34 = vld [vmem:[%s2328_s0 + $0x18] sm:$0xff]  ;;  %v71_v36 = vld [vmem:[#allocation8] sm:$0xff]  ;;  %621 = vst [vmem:[#allocation2 + $0x29] sm:$0x1] %v2032_v9 }
  0x3f   :  { %1687 = vmatprep.subr.bf16.mxu0 %v1686_v13  ;;  %v317_v35 = vld [vmem:[#allocation3 + $0xa8] sm:$0xff]  ;;  %v100_v38 = vld [vmem:[%s2328_s0 + $0x9] sm:$0xff]  ;;  %v90_v39 = vld [vmem:[%s2328_s0 + $0x20] sm:$0xff] }
  0x40   :  { %v72_v37 = vld [vmem:[#allocation8 + $0x8] sm:$0xff]  ;;  %v1702_v41 = vpack.c.bf16 %v317_v35, %v316_v33  ;;  %v318_v42 = vld [vmem:[#allocation3 + $0xb0] sm:$0xff]  ;;  %v319_v46 = vld [vmem:[#allocation3 + $0xb8] sm:$0xff] }
  0x41   :  { %1669 = vmatpush3.bf16.msra.mxu1 %v1666_v17  ;;  %v101_v40 = vld [vmem:[%s2328_s0 + $0x19] sm:$0xff]  ;;  %v307_v43 = vld [vmem:[%s2328_s0 + $0x2] sm:$0xff]  ;;  %v2160_v45 = vpack.c.bf16 %v72_v37, %v71_v36  ;;  %v1706_v50 = vpack.c.bf16 %v319_v46, %v318_v42  ;;  %v308_v52 = vld [vmem:[%s2328_s0 + $0xa] sm:$0xff] }
  0x42   :  { %1689 = vmatpush3.bf16.msra.mxu0 %v1686_v13  ;;  %1671 = vmatprep.subr.bf16.mxu1 %v1670_v20  ;;  %v73_v47 = vld [vmem:[#allocation8 + $0x10] sm:$0xff]  ;;  %v74_v48 = vld [vmem:[#allocation8 + $0x18] sm:$0xff]  ;;  %v75_v55 = vld [vmem:[#allocation8 + $0x20] sm:$0xff] }
  0x43   :  { %1691 = vmatprep.subr.bf16.mxu0 %v1690_v21  ;;  %v102_v49 = vld [vmem:[%s2328_s0 + $0x21] sm:$0xff]  ;;  %v2170_v51 = vpack.c.bf16 %v74_v48, %v73_v47  ;;  %v76_v56 = vld [vmem:[#allocation8 + $0x28] sm:$0xff]  ;;  %v79_v61 = vld [vmem:[#allocation8 + $0x40] sm:$0xff] }
  0x44   :  { %v309_v53 = vld [vmem:[%s2328_s0 + $0x1a] sm:$0xff]  ;;  %v310_v54 = vld [vmem:[%s2328_s0 + $0x22] sm:$0xff]  ;;  %v2188_v57 = vpack.c.bf16 %v76_v56, %v75_v55  ;;  %v83_v3 = vld [vmem:[#allocation8 + $0x60] sm:$0xff] }
  0x45   :  { %1673 = vmatpush3.bf16.msra.mxu1 %v1670_v20  ;;  %v77_v58 = vld [vmem:[#allocation8 + $0x30] sm:$0xff]  ;;  %v78_v59 = vld [vmem:[#allocation8 + $0x38] sm:$0xff]  ;;  %v80_v62 = vld [vmem:[#allocation8 + $0x48] sm:$0xff] }
  0x46   :  { %1693 = vmatpush3.bf16.msra.mxu0 %v1690_v21  ;;  %1675 = vmatprep.subr.bf16.mxu1 %v1674_v27  ;;  %v2192_v60 = vpack.c.bf16 %v78_v59, %v77_v58  ;;  %v2196_v63 = vpack.c.bf16 %v80_v62, %v79_v61  ;;  %v81_v0 = vld [vmem:[#allocation8 + $0x50] sm:$0xff]  ;;  %v82_v1 = vld [vmem:[#allocation8 + $0x58] sm:$0xff]  ;;  %v84_v4 = vld [vmem:[#allocation8 + $0x68] sm:$0xff] }
  0x47   :  { %1695 = vmatprep.subr.bf16.mxu0 %v1694_v28  ;;  %v2200_v2 = vpack.c.bf16 %v82_v1, %v81_v0  ;;  %v2204_v5 = vpack.c.bf16 %v84_v4, %v83_v3  ;;  %v85_v6 = vld [vmem:[#allocation8 + $0x70] sm:$0xff]  ;;  %v86_v7 = vld [vmem:[#allocation8 + $0x78] sm:$0xff]  ;;  %v651_v46 = vld [vmem:[#allocation6 + $0x80] sm:$0xff] }
  0x48   :  { %v2208_v8 = vpack.c.bf16 %v86_v7, %v85_v6  ;;  %v652_v47 = vld [vmem:[#allocation6 + $0x88] sm:$0xff]  ;;  %v657_v56 = vld [vmem:[#allocation6 + $0xb0] sm:$0xff]  ;;  %v658_v58 = vld [vmem:[#allocation6 + $0xb8] sm:$0xff] }
  0x49   :  { %1381 = vmatmul.mubr.msk.f32.vlgmr.msra.gmra.mrb[0].mxu0 %vm112_vm0, %v88_v31  ;;  %1677 = vmatpush3.bf16.msra.mxu1 %v1674_v27  ;;  %v1758_v48 = vpack.c.bf16 %v652_v47, %v651_v46  ;;  %v1770_v59 = vpack.c.bf16 %v658_v58, %v657_v56  ;;  %v659_v61 = vld [vmem:[#allocation6 + $0xc0] sm:$0xff]  ;;  %v660_v62 = vld [vmem:[#allocation6 + $0xc8] sm:$0xff]  ;;  %v661_v1 = vld [vmem:[#allocation6 + $0xd0] sm:$0xff] }
  0x4a   :  { %1697 = vmatpush3.bf16.msra.mxu0 %v1694_v28  ;;  %1383 = vmatprep.mubr.msk.f32.mxu0 %vm112_vm0, %v89_v34  ;;  %v1774_v0 = vpack.c.bf16 %v660_v62, %v659_v61  ;;  %v662_v3 = vld [vmem:[#allocation6 + $0xd8] sm:$0xff]  ;;  %v663_v6 = vld [vmem:[#allocation6 + $0xe0] sm:$0xff]  ;;  %v664_v7 = vld [vmem:[#allocation6 + $0xe8] sm:$0xff] }
  0x4b   :  { %1699 = vmatprep.subr.bf16.mxu0 %v1698_v32  ;;  %1710 = vmatprep.subr.bf16.mxu1 %v2030_v44  ;;  %v1778_v4 = vpack.c.bf16 %v662_v3, %v661_v1  ;;  %v637_v61 = vld [vmem:[#allocation6 + $0x38] sm:$0xff]  ;;  %v638_v1 = vld [vmem:[#allocation6 + $0x40] sm:$0xff]  ;;  %v639_v3 = vld [vmem:[#allocation6 + $0x48] sm:$0xff] }
  0x4c   :  { %1359 = vmatmul.mubr.msk.f32.vlgmr.msra.gmra.mrb[0].mxu1 %vm112_vm0, %v100_v38 }
  0x4d   :  { %1384 = vmatmul.mubr.msk.f32.gmra.mrb[2].mxu0 %vm112_vm0, %v90_v39  ;;  %1361 = vmatprep.mubr.msk.f32.mxu1 %vm112_vm0, %v101_v40 }
  0x4e   :  { %1701 = vmatpush3.bf16.msra.mxu0 %v1698_v32  ;;  %1402 = vmatprep.mubr.msk.f32.mxu0 %vm112_vm0, %v307_v43 }
  0x4f   :  { %1703 = vmatprep.subr.bf16.mxu0 %v1702_v41  ;;  %1712 = vmatpush3.bf16.msra.mxu1 %v2160_v45 }
  0x50   :  { %1362 = vmatmul.mubr.msk.f32.gmra.mrb[2].mxu1 %vm112_vm0, %v102_v49  ;;  %1713 = vmatprep.subr.bf16.mxu1 %v2030_v44  ;;  %v653_v49 = vld [vmem:[#allocation6 + $0x90] sm:$0xff] }
  0x51   :  { %1440 = vmatprep.mubr.msk.f32.mxu1 %vm2031_vm1, %v2032_v9 }
  0x52   :  { %1705 = vmatpush3.bf16.msra.mxu0 %v1702_v41 }
  0x53   :  { %1707 = vmatprep.subr.bf16.mxu0 %v1706_v50  ;;  %1715 = vmatpush3.bf16.msra.mxu1 %v2170_v51 }
  0x54   :  { %1716 = vmatprep.subr.bf16.mxu1 %v2030_v44 }
  0x56   :  { %1709 = vmatpush3.bf16.msra.mxu0 %v1706_v50  ;;  %v654_v50 = vld [vmem:[#allocation6 + $0x98] sm:$0xff] }
  0x57   :  { %1718 = vmatpush3.bf16.msra.mxu1 %v2188_v57  ;;  %1759 = vmatprep.subr.bf16.mxu0 %v1758_v48 }
  0x58   :  { %1719 = vmatprep.subr.bf16.mxu1 %v2030_v44 }
  0x59   :  { %1403 = vmatmul.mubr.msk.f32.vlgmr.msra.gmra.mrb[0].mxu0 %vm112_vm0, %v308_v52  ;;  %v1762_v52 = vpack.c.bf16 %v654_v50, %v653_v49 }
  0x5a   :  { %1405 = vmatprep.mubr.msk.f32.mxu0 %vm112_vm0, %v309_v53  ;;  %1761 = vmatpush3.bf16.msra.mxu0 %v1758_v48  ;;  %v655_v53 = vld [vmem:[#allocation6 + $0xa0] sm:$0xff] }
  0x5b   :  { %1721 = vmatpush3.bf16.msra.mxu1 %v2192_v60  ;;  %1763 = vmatprep.subr.bf16.mxu0 %v1762_v52 }
  0x5c   :  { %1722 = vmatprep.subr.bf16.mxu1 %v2030_v44 }
  0x5d   :  { %1406 = vmatmul.mubr.msk.f32.gmra.mrb[2].mxu0 %vm112_vm0, %v310_v54  ;;  %v656_v54 = vld [vmem:[#allocation6 + $0xa8] sm:$0xff] }
  0x5e   :  { %1765 = vmatpush3.bf16.msra.mxu0 %v1762_v52  ;;  %v1766_v55 = vpack.c.bf16 %v656_v54, %v655_v53  ;;  %v632_v52 = vld [vmem:[#allocation6 + $0x10] sm:$0xff]  ;;  %v633_v53 = vld [vmem:[#allocation6 + $0x18] sm:$0xff] }
  0x5f   :  { %1724 = vmatpush3.bf16.msra.mxu1 %v2196_v63 }
  0x60   :  { %1725 = vmatprep.subr.bf16.mxu1 %v2030_v44  ;;  %1767 = vmatprep.subr.bf16.mxu0 %v1766_v55 }
  0x62   :  { %1769 = vmatpush3.bf16.msra.mxu0 %v1766_v55 }
  0x63   :  { %1727 = vmatpush3.bf16.msra.mxu1 %v2200_v2  ;;  %1771 = vmatprep.subr.bf16.mxu0 %v1770_v59 }
  0x64   :  { %1728 = vmatprep.subr.bf16.mxu1 %v2030_v44 }
  0x66   :  { %1773 = vmatpush3.bf16.msra.mxu0 %v1770_v59  ;;  %v1794_v59 = vpack.c.bf16 %v633_v53, %v632_v52 }
  0x67   :  { %1730 = vmatpush3.bf16.msra.mxu1 %v2204_v5  ;;  %1775 = vmatprep.subr.bf16.mxu0 %v1774_v0 }
  0x68   :  { %1731 = vmatprep.subr.bf16.mxu1 %v2030_v44 }
  0x6a   :  { %1777 = vmatpush3.bf16.msra.mxu0 %v1774_v0 }
  0x6b   :  { %1733 = vmatpush3.bf16.msra.mxu1 %v2208_v8  ;;  %1779 = vmatprep.subr.bf16.mxu0 %v1778_v4 }
  0x6c   :  { %1734 = vmatprep.subr.bf16.mxu1 %v2030_v44 }
  0x6e   :  { %1781 = vmatpush3.bf16.msra.mxu0 %v1778_v4  ;;  %v1806_v4 = vpack.c.bf16 %v639_v3, %v638_v1 }
 0x11f   :  { %v1360_v10 = vpop.f32.mrb[0].mxu1 }
 0x120   :  { %v191_v11 = vpop.f32.mrb[1].mxu1 }
 0x123   :  { %v1363_v12 = vpop.f32.mrb[2].mxu1 }
 0x124   :  { %v201_v13 = vpop.f32.mrb[3].mxu1 }
 0x12c   :  { %v1404_v14 = vpop.f32.mrb[0].mxu0 }
 0x12d   :  { %v2218_v15 = vadd.f32 %v1404_v14, %v1360_v10  ;;  %v398_v16 = vpop.f32.mrb[1].mxu0  ;;  %v1782_v10 = vpack.c.bf16 %v664_v7, %v663_v6  ;;  %v630_v14 = vld [vmem:[#allocation6] sm:$0xff]  ;;  %v640_v6 = vld [vmem:[#allocation6 + $0x50] sm:$0xff]  ;;  %v641_v7 = vld [vmem:[#allocation6 + $0x58] sm:$0xff] }
 0x12e   :  { %v2220_v17 = vadd.f32 %v398_v16, %v191_v11  ;;  %v665_v11 = vld [vmem:[#allocation6 + $0xf0] sm:$0xff]  ;;  %v631_v16 = vld [vmem:[#allocation6 + $0x8] sm:$0xff] }
 0x12f   :  { %v433_v29 = vmul.f32 %v2218_v15, %v2218_v15  ;;  %1783 = vmatprep.subr.bf16.mxu0 %v1782_v10 }
 0x130   :  { %v1407_v18 = vpop.f32.mrb[2].mxu0  ;;  %v423_v21 = vadd.f32 %v2220_v17, %v2218_v15  ;;  %v432_v30 = vmul.f32 %v2220_v17, %v2220_v17  ;;  %1785 = vmatpush3.bf16.msra.mxu0 %v1782_v10  ;;  %v1810_v10 = vpack.c.bf16 %v641_v7, %v640_v6 }
 0x131   :  { %v2222_v19 = vadd.f32 %v1407_v18, %v1363_v12  ;;  %v408_v20 = vpop.f32.mrb[3].mxu0  ;;  %v666_v12 = vld [vmem:[#allocation6 + $0xf8] sm:$0xff]  ;;  %v1790_v18 = vpack.c.bf16 %v631_v16, %v630_v14  ;;  %v644_v14 = vld [vmem:[#allocation6 + $0x70] sm:$0xff] }
 0x132   :  { %v2226_v22 = vadd.f32 %v408_v20, %v201_v13  ;;  %v436_v34 = vadd.f32 %v433_v29, %v432_v30  ;;  %v1786_v13 = vpack.c.bf16 %v666_v12, %v665_v11  ;;  %v595_v30 = vlaneseq  ;;  %v642_v11 = vld [vmem:[#allocation6 + $0x60] sm:$0xff]  ;;  %v643_v12 = vld [vmem:[#allocation6 + $0x68] sm:$0xff]  ;;  %v645_v16 = vld [vmem:[#allocation6 + $0x78] sm:$0xff] }
 0x133   :  { %v435_v36 = vmul.f32 %v2222_v19, %v2222_v19 }
 0x134   :  { %v424_v23 = vadd.f32 %v2226_v22, %v423_v21  ;;  %v434_v32 = vmul.f32 %v2226_v22, %v2226_v22  ;;  %1787 = vmatprep.subr.bf16.mxu0 %v1786_v13 }
 0x135   :  { %1789 = vmatpush3.bf16.msra.mxu0 %v1786_v13  ;;  %v1814_v13 = vpack.c.bf16 %v643_v12, %v642_v11 }
 0x136   :  { %v425_v24 = vadd.f32 %v2222_v19, %v424_v23  ;;  %v437_v35 = vadd.f32 %v436_v34, %v434_v32  ;;  %1791 = vmatprep.subr.bf16.mxu0 %v1790_v18  ;;  %v421_v32 = vld [vmem:[%s2332_s4] sm:$0x1] }
 0x138   :  { %v426_v25 = vrot.slane %v425_v24, 4  ;;  %v438_v37 = vadd.f32 %v437_v35, %v435_v36  ;;  %v422_v36 = vld [vmem:[%s2333_s5] sm:$0x1] }
 0x13a   :  { %v427_v26 = vadd.f32 %v426_v25, %v425_v24  ;;  %v439_v38 = vrot.slane %v438_v37, 4 }
 0x13c   :  { %v428_v27 = vrot.slane %v427_v26, 2  ;;  %v440_v39 = vadd.f32 %v439_v38, %v438_v37 }
 0x13e   :  { %v429_v28 = vadd.f32 %v428_v27, %v427_v26  ;;  %v441_v40 = vrot.slane %v440_v39, 2 }
 0x140   :  { %v430_v31 = vrot.slane %v429_v28, 1  ;;  %v442_v41 = vadd.f32 %v441_v40, %v440_v39 }
 0x142   :  { %v431_v33 = vadd.f32 %v430_v31, %v429_v28  ;;  %v443_v42 = vrot.slane %v442_v41, 1  ;;  %v596_v31 = vshrl.u32 %v595_v30, 7 }
 0x144   :  { %1441 = vmatmul.mubr.f32.vlgmr.msra.gmra.mrb[4].mxu1 %v431_v33  ;;  %v444_v43 = vadd.f32 %v443_v42, %v442_v41  ;;  %v2277_v33 = vsub.s32 0, %v596_v31 }
 0x145   :  { %1736 = vmatpush3.bf16.msra.mxu1 %v2160_v45  ;;  %1475 = vmatprep.mubr.msk.f32.mxu1 %vm2031_vm1, %v2032_v9 }
 0x146   :  { %1737 = vmatprep.subr.bf16.mxu1 %v2030_v44 }
 0x149   :  { %1739 = vmatpush3.bf16.msra.mxu1 %v2170_v51 }
 0x14a   :  { %1740 = vmatprep.subr.bf16.mxu1 %v2030_v44 }
 0x14d   :  { %1742 = vmatpush3.bf16.msra.mxu1 %v2188_v57 }
 0x14e   :  { %1743 = vmatprep.subr.bf16.mxu1 %v2030_v44 }
 0x151   :  { %1745 = vmatpush3.bf16.msra.mxu1 %v2192_v60 }
 0x152   :  { %1746 = vmatprep.subr.bf16.mxu1 %v2030_v44 }
 0x155   :  { %1748 = vmatpush3.bf16.msra.mxu1 %v2196_v63 }
 0x156   :  { %1749 = vmatprep.subr.bf16.mxu1 %v2030_v44 }
 0x159   :  { %1751 = vmatpush3.bf16.msra.mxu1 %v2200_v2 }
 0x15a   :  { %1752 = vmatprep.subr.bf16.mxu1 %v2030_v44 }
 0x15d   :  { %1754 = vmatpush3.bf16.msra.mxu1 %v2204_v5 }
 0x15e   :  { %1755 = vmatprep.subr.bf16.mxu1 %v2030_v44 }
 0x161   :  { %1757 = vmatpush3.bf16.msra.mxu1 %v2208_v8 }
 0x162   :  { %1854 = vmatprep.subr.bf16.mxu1 %v2030_v44 }
 0x164   :  { %1476 = vmatmul.mubr.f32.vlgmr.msra.gmra.mrb[6].mxu1 %v444_v43 }
 0x165   :  { %1856 = vmatpush3.bf16.msra.mxu1 %v2160_v45  ;;  %1624 = vmatprep.mubr.msk.f32.mxu1 %vm2031_vm1, %v2032_v9 }
 0x166   :  { %1857 = vmatprep.subr.bf16.mxu1 %v2030_v44 }
 0x169   :  { %1859 = vmatpush3.bf16.msra.mxu1 %v2170_v51 }
 0x16a   :  { %1860 = vmatprep.subr.bf16.mxu1 %v2030_v44 }
 0x16d   :  { %1862 = vmatpush3.bf16.msra.mxu1 %v2188_v57 }
 0x16e   :  { %1863 = vmatprep.subr.bf16.mxu1 %v2030_v44 }
 0x171   :  { %1865 = vmatpush3.bf16.msra.mxu1 %v2192_v60 }
 0x172   :  { %1866 = vmatprep.subr.bf16.mxu1 %v2030_v44 }
 0x175   :  { %1868 = vmatpush3.bf16.msra.mxu1 %v2196_v63 }
 0x176   :  { %1869 = vmatprep.subr.bf16.mxu1 %v2030_v44 }
 0x179   :  { %1871 = vmatpush3.bf16.msra.mxu1 %v2200_v2 }
 0x17a   :  { %1872 = vmatprep.subr.bf16.mxu1 %v2030_v44 }
 0x17d   :  { %1874 = vmatpush3.bf16.msra.mxu1 %v2204_v5 }
 0x17e   :  { %1875 = vmatprep.subr.bf16.mxu1 %v2030_v44 }
 0x181   :  { %1877 = vmatpush3.bf16.msra.mxu1 %v2208_v8 }
 0x182   :  { %1878 = vmatprep.subr.bf16.mxu1 %v2030_v44 }
 0x217   :  { %v511_v20 = vpop.f32.mrb[4].mxu1 }
 0x218   :  { %v1442_v21 = vpop.f32.mrb[5].mxu1  ;;  %v515_v23 = vmul.f32 0.001953125, %v511_v20  ;;  %v842_v20 = vld [vmem:[#allocation6 + $0x100] sm:$0xff] }
 0x219   :  { %v843_v21 = vld [vmem:[#allocation6 + $0x108] sm:$0xff] }
 0x21a   :  { %v587_v25 = vmul.f32 %v515_v23, %v515_v23 }
 0x237   :  { %v582_v24 = vpop.f32.mrb[6].mxu1 }
 0x238   :  { %v586_v26 = vmul.f32 0.001953125, %v582_v24  ;;  %v1477_v27 = vpop.f32.mrb[7].mxu1  ;;  %v844_v24 = vld [vmem:[#allocation6 + $0x110] sm:$0xff] }
 0x23a   :  { %v588_v28 = vsub.f32 %v586_v26, %v587_v25  ;;  %v845_v25 = vld [vmem:[#allocation6 + $0x118] sm:$0xff] }
 0x23b   :  { %v1826_v26 = vpack.c.bf16 %v845_v25, %v844_v24 }
 0x23c   :  { %v589_v29 = vadd.f32 1e-05, %v588_v28  ;;  %v846_v28 = vld [vmem:[#allocation6 + $0x120] sm:$0xff] }
 0x23e   :  { %1927 = vrsqrt.f32 %v589_v29  ;;  %v847_v29 = vld [vmem:[#allocation6 + $0x128] sm:$0xff] }
 0x23f   :  { %v1830_v31 = vpack.c.bf16 %v847_v29, %v846_v28 }
 0x248   :  { %v1928_v34 = vpop.eup %1927 }
 0x249   :  { %v591_v35 = vmul.f32 %v1928_v34, %v421_v32  ;;  %v848_v34 = vld [vmem:[#allocation6 + $0x130] sm:$0xff] }
 0x24b   :  { %v592_v37 = vmul.f32 %v591_v35, %v515_v23  ;;  %v598_v38 = vrot.slane %v591_v35, %v2277_v33  ;;  %v1822_v23 = vpack.c.bf16 %v843_v21, %v842_v20  ;;  %v849_v35 = vld [vmem:[#allocation6 + $0x138] sm:$0xff] }
 0x24d   :  { %v593_v39 = vsub.f32 %v422_v36, %v592_v37  ;;  %v600_v40 = vmul.f32 %v2220_v17, %v598_v38  ;;  %v601_v41 = vmul.f32 %v2218_v15, %v598_v38  ;;  %v602_v42 = vmul.f32 %v2226_v22, %v598_v38  ;;  %v634_v15 = vld [vmem:[#allocation6 + $0x20] sm:$0xff]  ;;  %v635_v17 = vld [vmem:[#allocation6 + $0x28] sm:$0xff]  ;;  %v636_v22 = vld [vmem:[#allocation6 + $0x30] sm:$0xff] }
 0x24e   :  { %v603_v43 = vmul.f32 %v2222_v19, %v598_v38  ;;  %v1798_v19 = vpack.c.bf16 %v635_v17, %v634_v15  ;;  %v1802_v0 = vpack.c.bf16 %v637_v61, %v636_v22  ;;  %v1834_v37 = vpack.c.bf16 %v849_v35, %v848_v34  ;;  %v850_v38 = vld [vmem:[#allocation6 + $0x140] sm:$0xff] }
 0x24f   :  { %v608_v46 = vrot.slane %v593_v39, %v2277_v33  ;;  %v851_v39 = vld [vmem:[#allocation6 + $0x148] sm:$0xff] }
 0x251   :  { %v610_v47 = vadd.f32 %v608_v46, %v600_v40  ;;  %v611_v48 = vadd.f32 %v608_v46, %v601_v41  ;;  %v612_v49 = vadd.f32 %v608_v46, %v602_v42  ;;  %v613_v50 = vadd.f32 %v608_v46, %v603_v43  ;;  %v852_v41 = vld [vmem:[#allocation6 + $0x150] sm:$0xff]  ;;  %v853_v42 = vld [vmem:[#allocation6 + $0x158] sm:$0xff]  ;;  %v854_v46 = vld [vmem:[#allocation6 + $0x160] sm:$0xff] }
 0x252   :  { %v1838_v40 = vpack.c.bf16 %v851_v39, %v850_v38  ;;  %v1842_v43 = vpack.c.bf16 %v853_v42, %v852_v41 }
 0x253   :  { %v614_v54 = vmax.f32 %v610_v47, 0.0  ;;  %v615_v55 = vmax.f32 %v611_v48, 0.0  ;;  %v616_v56 = vmax.f32 %v612_v49, 0.0  ;;  %v617_v58 = vmax.f32 %v613_v50, 0.0  ;;  %v855_v47 = vld [vmem:[#allocation6 + $0x168] sm:$0xff]  ;;  %v856_v49 = vld [vmem:[#allocation6 + $0x170] sm:$0xff] }
 0x254   :  { %v1846_v48 = vpack.c.bf16 %v855_v47, %v854_v46  ;;  %v857_v50 = vld [vmem:[#allocation6 + $0x178] sm:$0xff] }
 0x255   :  { %622 = vst [vmem:[#allocation2 + $0x1] sm:$0xff] %v614_v54  ;;  %623 = vst [vmem:[#allocation2 + $0x9] sm:$0xff] %v615_v55  ;;  %1510 = vmatprep.mubr.f32.mxu0 %v614_v54  ;;  %v1850_v52 = vpack.c.bf16 %v857_v50, %v856_v49 }
 0x256   :  { %624 = vst [vmem:[#allocation2 + $0x19] sm:$0xff] %v616_v56  ;;  %625 = vst [vmem:[#allocation2 + $0x21] sm:$0xff] %v617_v58  ;;  %1511 = vmatmul.mubr.f32.vlgmr.msra.gmra.mrb[4].mxu0 %v615_v55 }
 0x257   :  { %1793 = vmatpush3.bf16.msra.mxu0 %v1790_v18  ;;  %1513 = vmatprep.mubr.f32.mxu0 %v616_v56  ;;  %v1818_v18 = vpack.c.bf16 %v645_v16, %v644_v14 }
 0x258   :  { %1795 = vmatprep.subr.bf16.mxu0 %v1794_v59 }
 0x25a   :  { %1514 = vmatmul.mubr.f32.gmra.mrb[6].mxu0 %v617_v58 }
 0x25b   :  { %1797 = vmatpush3.bf16.msra.mxu0 %v1794_v59 }
 0x25c   :  { %v626_v62 = vld [vmem:[#allocation2] sm:$0xff]  ;;  %1799 = vmatprep.subr.bf16.mxu0 %v1798_v19  ;;  %v627_v27 = vld [vmem:[#allocation2 + $0x8] sm:$0xff] }
 0x25d   :  { %1548 = vmatprep.mubr.f32.mxu0 %v626_v62  ;;  %v628_v30 = vld [vmem:[#allocation2 + $0x18] sm:$0xff]  ;;  %v629_v32 = vld [vmem:[#allocation2 + $0x20] sm:$0xff]  ;;  %v838_v53 = vld [vmem:[#allocation2 + $0xa] sm:$0xff] }
 0x25e   :  { %v837_v36 = vld [vmem:[#allocation2 + $0x2] sm:$0xff]  ;;  %v839_v54 = vld [vmem:[#allocation2 + $0x1a] sm:$0xff] }
 0x25f   :  { %1801 = vmatpush3.bf16.msra.mxu0 %v1798_v19  ;;  %v840_v55 = vld [vmem:[#allocation2 + $0x22] sm:$0xff] }
 0x260   :  { %1803 = vmatprep.subr.bf16.mxu0 %v1802_v0 }
 0x263   :  { %1805 = vmatpush3.bf16.msra.mxu0 %v1802_v0 }
 0x264   :  { %1807 = vmatprep.subr.bf16.mxu0 %v1806_v4 }
 0x267   :  { %1809 = vmatpush3.bf16.msra.mxu0 %v1806_v4 }
 0x268   :  { %1811 = vmatprep.subr.bf16.mxu0 %v1810_v10 }
 0x26b   :  { %1813 = vmatpush3.bf16.msra.mxu0 %v1810_v10 }
 0x26c   :  { %1815 = vmatprep.subr.bf16.mxu0 %v1814_v13 }
 0x26f   :  { %1817 = vmatpush3.bf16.msra.mxu0 %v1814_v13 }
 0x270   :  { %1819 = vmatprep.subr.bf16.mxu0 %v1818_v18 }
 0x273   :  { %1821 = vmatpush3.bf16.msra.mxu0 %v1818_v18 }
 0x274   :  { %1823 = vmatprep.subr.bf16.mxu0 %v1822_v23 }
 0x276   :  { %1549 = vmatmul.mubr.f32.vlgmr.msra.gmra.mrb[4].mxu0 %v627_v27 }
 0x277   :  { %1551 = vmatprep.mubr.f32.mxu0 %v628_v30  ;;  %1825 = vmatpush3.bf16.msra.mxu0 %v1822_v23 }
 0x278   :  { %1827 = vmatprep.subr.bf16.mxu0 %v1826_v26 }
 0x27a   :  { %1552 = vmatmul.mubr.f32.gmra.mrb[6].mxu0 %v629_v32 }
 0x27b   :  { %1829 = vmatpush3.bf16.msra.mxu0 %v1826_v26  ;;  %1586 = vmatprep.mubr.f32.mxu0 %v837_v36 }
 0x27c   :  { %1831 = vmatprep.subr.bf16.mxu0 %v1830_v31 }
 0x27f   :  { %1833 = vmatpush3.bf16.msra.mxu0 %v1830_v31 }
 0x280   :  { %1835 = vmatprep.subr.bf16.mxu0 %v1834_v37 }
 0x283   :  { %1837 = vmatpush3.bf16.msra.mxu0 %v1834_v37 }
 0x284   :  { %1839 = vmatprep.subr.bf16.mxu0 %v1838_v40 }
 0x287   :  { %1841 = vmatpush3.bf16.msra.mxu0 %v1838_v40 }
 0x288   :  { %1843 = vmatprep.subr.bf16.mxu0 %v1842_v43 }
 0x28b   :  { %1845 = vmatpush3.bf16.msra.mxu0 %v1842_v43 }
 0x28c   :  { %1847 = vmatprep.subr.bf16.mxu0 %v1846_v48 }
 0x28f   :  { %1849 = vmatpush3.bf16.msra.mxu0 %v1846_v48 }
 0x290   :  { %1851 = vmatprep.subr.bf16.mxu0 %v1850_v52 }
 0x293   :  { %1853 = vmatpush3.bf16.msra.mxu0 %v1850_v52 }
 0x296   :  { %1587 = vmatmul.mubr.f32.vlgmr.msra.gmra.mrb[4].mxu0 %v838_v53 }
 0x297   :  { %1589 = vmatprep.mubr.f32.mxu0 %v839_v54 }
 0x29a   :  { %1590 = vmatmul.mubr.f32.gmra.mrb[6].mxu0 %v840_v55 }
 0x369   :  { %v1588_v56 = vpop.f32.mrb[4].mxu0 }
 0x36a   :  { %v959_v58 = vmul.f32 %v1588_v56, %v1588_v56  ;;  %v924_v59 = vpop.f32.mrb[5].mxu0 }
 0x36b   :  { %v949_v15 = vadd.f32 %v1588_v56, %v924_v59  ;;  %v958_v17 = vmul.f32 %v924_v59, %v924_v59 }
 0x36d   :  { %v962_v19 = vadd.f32 %v959_v58, %v958_v17  ;;  %v1591_v22 = vpop.f32.mrb[6].mxu0 }
 0x36e   :  { %v934_v61 = vpop.f32.mrb[7].mxu0  ;;  %v961_v1 = vmul.f32 %v1591_v22, %v1591_v22 }
 0x36f   :  { %v950_v62 = vadd.f32 %v949_v15, %v934_v61  ;;  %v960_v0 = vmul.f32 %v934_v61, %v934_v61 }
 0x371   :  { %v951_v3 = vadd.f32 %v1591_v22, %v950_v62  ;;  %v963_v4 = vadd.f32 %v962_v19, %v960_v0 }
 0x373   :  { %v952_v6 = vrot.slane %v951_v3, 4  ;;  %v964_v7 = vadd.f32 %v963_v4, %v961_v1 }
 0x375   :  { %v953_v10 = vadd.f32 %v952_v6, %v951_v3  ;;  %v965_v16 = vrot.slane %v964_v7, 4 }
 0x377   :  { %v954_v11 = vrot.slane %v953_v10, 2  ;;  %v966_v18 = vadd.f32 %v965_v16, %v964_v7 }
 0x379   :  { %v955_v12 = vadd.f32 %v954_v11, %v953_v10 }
 0x37b   :  { %v956_v13 = vrot.slane %v955_v12, 1 }
 0x37d   :  { %v957_v14 = vadd.f32 %v956_v13, %v955_v12 }
 0x37f   :  { %1625 = vmatmul.mubr.f32.vlgmr.msra.gmra.mrb[8].mxu1 %v957_v14 }
 0x380   :  { %1880 = vmatpush3.bf16.msra.mxu1 %v2160_v45  ;;  %1659 = vmatprep.mubr.msk.f32.mxu1 %vm2031_vm1, %v2032_v9  ;;  %v967_v45 = vrot.slane %v966_v18, 2 }
 0x381   :  { %1881 = vmatprep.subr.bf16.mxu1 %v2030_v44 }
 0x384   :  { %1883 = vmatpush3.bf16.msra.mxu1 %v2170_v51  ;;  %v968_v51 = vadd.f32 %v967_v45, %v966_v18 }
 0x385   :  { %1884 = vmatprep.subr.bf16.mxu1 %v2030_v44 }
 0x388   :  { %1886 = vmatpush3.bf16.msra.mxu1 %v2188_v57  ;;  %v969_v57 = vrot.slane %v968_v51, 1 }
 0x389   :  { %1887 = vmatprep.subr.bf16.mxu1 %v2030_v44 }
 0x38c   :  { %1889 = vmatpush3.bf16.msra.mxu1 %v2192_v60  ;;  %v970_v60 = vadd.f32 %v969_v57, %v968_v51 }
 0x38d   :  { %1890 = vmatprep.subr.bf16.mxu1 %v2030_v44 }
 0x390   :  { %1892 = vmatpush3.bf16.msra.mxu1 %v2196_v63 }
 0x391   :  { %1893 = vmatprep.subr.bf16.mxu1 %v2030_v44 }
 0x394   :  { %1895 = vmatpush3.bf16.msra.mxu1 %v2200_v2 }
 0x395   :  { %1896 = vmatprep.subr.bf16.mxu1 %v2030_v44 }
 0x398   :  { %1898 = vmatpush3.bf16.msra.mxu1 %v2204_v5  ;;  %v947_v5 = vld [vmem:[%s2334_s6] sm:$0x1]  ;;  %s1997_s6 = scalar_lea.vmem %s1154_s27, 512 }
 0x399   :  { %1899 = vmatprep.subr.bf16.mxu1 %v2030_v44  ;;  %p1998_p10 = scmp.ne.s32.totalorder %s1154_s27, %s1997_s6  ;;  %p2003_p12 = scmp.lt.s32.totalorder %s1997_s6, %s1997_s6 }
 0x39b   :  { %p2004_p13 = por %p2003_p12, %p2002_p11 }
 0x39c   :  { %1901 = vmatpush3.bf16.msra.mxu1 %v2208_v8  ;;  %v948_v8 = vld [vmem:[%s2335_s7] sm:$0x1] }
 0x39d   :  { %p2005_p0 = pnand %p2004_p13, %p1998_p10 }
 0x39f   :  { %1660 = vmatmul.mubr.f32.vlgmr.msra.gmra.mrb[10].mxu1 %v970_v60 }
 0x452   :  { %v1037_v9 = vpop.f32.mrb[8].mxu1 }
 0x453   :  { %v1626_v20 = vpop.f32.mrb[9].mxu1  ;;  %v1041_v63 = vmul.f32 0.001953125, %v1037_v9 }
 0x455   :  { %v1113_v23 = vmul.f32 %v1041_v63, %v1041_v63 }
 0x472   :  { %v1108_v21 = vpop.f32.mrb[10].mxu1 }
 0x473   :  { %v1112_v24 = vmul.f32 0.001953125, %v1108_v21  ;;  %v1661_v25 = vpop.f32.mrb[11].mxu1 }
 0x475   :  { %v1114_v2 = vsub.f32 %v1112_v24, %v1113_v23 }
 0x477   :  { %v1115_v26 = vadd.f32 1e-05, %v1114_v2 }
 0x479   :  { %1929 = vrsqrt.f32 %v1115_v26 }
 0x483   :  { %v1930_v44 = vpop.eup %1929 }
 0x484   :  { %v1117_v27 = vmul.f32 %v1930_v44, %v947_v5 }
 0x486   :  { %v1118_v28 = vmul.f32 %v1117_v27, %v1041_v63  ;;  %v1124_v29 = vrot.slane %v1117_v27, %v2277_v33 }
 0x488   :  { %v1119_v30 = vsub.f32 %v948_v8, %v1118_v28  ;;  %v1126_v31 = vmul.f32 %v1124_v29, %v924_v59  ;;  %v1127_v32 = vmul.f32 %v1588_v56, %v1124_v29  ;;  %v1128_v34 = vmul.f32 %v1124_v29, %v934_v61 }
 0x489   :  { %v1129_v35 = vmul.f32 %v1591_v22, %v1124_v29 }
 0x48a   :  { %v1134_v36 = vrot.slane %v1119_v30, %v2277_v33 }
 0x48c   :  { %v1136_v37 = vadd.f32 %v1134_v36, %v1126_v31  ;;  %v1137_v38 = vadd.f32 %v1134_v36, %v1127_v32  ;;  %v1138_v39 = vadd.f32 %v1134_v36, %v1128_v34  ;;  %v1139_v40 = vadd.f32 %v1134_v36, %v1129_v35 }
 0x48e   :  { %v1140_v41 = vmax.f32 %v1136_v37, 0.0  ;;  %v1141_v42 = vmax.f32 %v1137_v38, 0.0  ;;  %v1142_v43 = vmax.f32 %v1138_v39, 0.0  ;;  %v1143_v46 = vmax.f32 %v1139_v40, 0.0 }
 0x490   :  { %1144 = vst [vmem:[#allocation9] sm:$0xff] %v1140_v41  ;;  %1145 = vst [vmem:[#allocation9 + $0x8] sm:$0xff] %v1141_v42 }
 0x491   :  { %1146 = vst [vmem:[#allocation9 + $0x10] sm:$0xff] %v1142_v43  ;;  %1147 = vst [vmem:[#allocation9 + $0x18] sm:$0xff] %v1143_v46 }
 0x492   :  { %2008 = shalt.err (!%p2005_p0)
}
 0x493   :  { %s2009_s2 = scalar_lea.hbm %s2336_s8, 512 }
 0x494   :  { %p2010_p1 = scmp.ne.s32.totalorder %s2336_s8, %s2009_s2  ;;  %p2013_p2 = scmp.lt.u32.totalorder %s2009_s2, %s2336_s8 }
 0x496   :  { %p2015_p3 = pnand %p2013_p2, %p2010_p1 }
 0x498   :  { %2018 = shalt.err (!%p2015_p3)
}
 0x499   :  { %1159 = dma.vmem_to_hbm [thread:$0]  %s1154_s27, 512, %s2336_s8, [#allocation5], %s2027_s17, %s2027_s17, %s2028_s18  }
 0x49a   :  { %2023 = dma.done.wait [#allocation5], 512  }
 0x49b   :  { %2024 = vsyncadd [#allocation5], 4294966784 }
 0x49c   :  { %1163 = vsyncpa [#allocation4], 1 }
 0x49d   :  { %1164 = vsyncpa [#allocation7], 1 }
 0x49e   :  { %1165 = vsyncpa [#allocation5], 1 }

</bundles_post_ra>
